<compile_context>
chip_gen: v7x
topology: tpu7x:2x2x1
jax: 0.10.0
libtpu: 0.0.40
codegen_flags: <defaults>
</compile_context>

<pallas_src>
import math
from functools import partial

import jax
import jax.numpy as jnp
from jax.experimental import pallas as pl
from jax.experimental.pallas import tpu as pltpu


def _round_up(x, m):
    return ((x + m - 1) // m) * m


# --------------------- AR-net MLP (dense MADE stand-in) ----------------------

def _mlp_kernel(x_ref, w1_ref, b1_ref, w2_ref, b2_ref, o_ref):
    # bf16 MXU operands, f32 accumulation; elementwise epilogue stays f32.
    x = x_ref[...].astype(jnp.bfloat16)
    h = jnp.dot(x, w1_ref[...], preferred_element_type=jnp.float32) + b1_ref[...]
    h = jnp.maximum(h, 0.0)
    o_ref[...] = (jnp.dot(h.astype(jnp.bfloat16), w2_ref[...],
                          preferred_element_type=jnp.float32) + b2_ref[...])


def mlp_pallas(x, w1, b1, w2, b2, tm=512):
    """y = relu(x @ w1 + b1) @ w2 + b2, row-tiled."""
    M, din = x.shape
    dh = w1.shape[1]
    dout = w2.shape[1]
    tm = min(tm, _round_up(M, 8))
    Mp = _round_up(M, tm)
    xp = jnp.pad(x, ((0, Mp - M), (0, 0))) if Mp != M else x
    out = pl.pallas_call(
        _mlp_kernel,
        out_shape=jax.ShapeDtypeStruct((Mp, dout), jnp.float32),
        grid=(Mp // tm,),
        in_specs=[
            pl.BlockSpec((tm, din), lambda i: (i, 0)),
            pl.BlockSpec((din, dh), lambda i: (0, 0)),
            pl.BlockSpec((1, dh), lambda i: (0, 0)),
            pl.BlockSpec((dh, dout), lambda i: (0, 0)),
            pl.BlockSpec((1, dout), lambda i: (0, 0)),
        ],
        out_specs=pl.BlockSpec((tm, dout), lambda i: (i, 0)),
        compiler_params=pltpu.CompilerParams(dimension_semantics=("parallel",)),
    )(xp, w1.astype(jnp.bfloat16), b1.reshape(1, -1).astype(jnp.float32),
      w2.astype(jnp.bfloat16), b2.reshape(1, -1).astype(jnp.float32))
    return out[:M]


# ----------- fused per-row kernel: mixture log_prob + energy net -------------

def _row_kernel(x_ref, ctx_ref, logits_ref, locs_ref, scales_ref,
                w1x_ref, w1c_ref, b1_ref, w2_ref, b2_ref,
                energy_ref, logq_ref, *, K):
    x = x_ref[...]                                  # (tm, P) f32; col 0 = data point

    # --- Gaussian-mixture log_prob for all (1+S) points, batched over K ---
    logits = logits_ref[...]                        # (tm, K)
    locs = locs_ref[...]                            # (tm, K)
    scales = scales_ref[...]                        # (tm, K)
    lmax = jnp.max(logits, axis=-1, keepdims=True)
    logz = lmax + jnp.log(jnp.sum(jnp.exp(logits - lmax), axis=-1, keepdims=True))
    inv_scales = 1.0 / scales                       # hoisted: one divide per (m, k)
    const = logits - logz - jnp.log(scales) - 0.5 * math.log(2.0 * math.pi)  # (tm, K)

    comps = []
    for k in range(K):                              # K small & static -> unrolled
        z = (x - locs[:, k:k + 1]) * inv_scales[:, k:k + 1]
        comps.append(const[:, k:k + 1] - 0.5 * z * z)          # (tm, P)
    mx = comps[0]
    for k in range(1, K):
        mx = jnp.maximum(mx, comps[k])
    ssum = jnp.exp(comps[0] - mx)                   # single max-trick logsumexp
    for k in range(1, K):
        ssum = ssum + jnp.exp(comps[k] - mx)
    logq_ref[...] = mx + jnp.log(ssum)              # (tm, P), lane-dense store

    # --- energy net: context projected ONCE per row (no (1+S) duplication) ---
    ctx_proj = jnp.dot(ctx_ref[...].astype(jnp.bfloat16), w1c_ref[...],
                       preferred_element_type=jnp.float32) + b1_ref[...]     # (tm, H)
    w1x = w1x_ref[...][None, :, :]                  # (1, 1, H), f32 (VPU path)
    w2 = w2_ref[...][None, :, :]                    # (1, 1, H)
    h = jnp.maximum(x[:, :, None] * w1x + ctx_proj[:, None, :], 0.0)         # (tm, P, H)
    # dout == 1: VPU multiply + XLU lane reduce instead of a 1-wide MXU matmul.
    energy_ref[...] = jnp.sum(h * w2, axis=-1) + b2_ref[...]                 # (tm, P)


def row_kernel_pallas(x_cat, ctx, logits, locs, scales,
                      en_w1, en_b1, en_w2, en_b2, tm=256):
    M, P = x_cat.shape
    C = ctx.shape[1]
    K = logits.shape[1]
    H = en_w1.shape[1]
    tm = min(tm, _round_up(M, 8))
    Mp = _round_up(M, tm)
    pad = Mp - M

    def padr(a, val=0.0):
        return jnp.pad(a, ((0, pad), (0, 0)), constant_values=val) if pad else a

    w1x = en_w1[:1, :].astype(jnp.float32)          # (1, H)  point weight row
    w1c = en_w1[1:, :].astype(jnp.bfloat16)         # (C, H)  context weights (MXU)
    b1 = en_b1.reshape(1, -1).astype(jnp.float32)
    w2r = en_w2.reshape(1, -1).astype(jnp.float32)  # (1, H)
    b2 = en_b2.reshape(1, 1).astype(jnp.float32)

    flops = Mp * (2 * C * H + P * 5 * H + P * K * 5)
    bytes_accessed = 4 * Mp * (3 * P + C + 3 * K) + 2 * C * H + 4 * (3 * H + 1)
    transcendentals = Mp * (2 * K + 1 + P * (K + 1))

    energy, logq = pl.pallas_call(
        partial(_row_kernel, K=K),
        out_shape=(jax.ShapeDtypeStruct((Mp, P), jnp.float32),
                   jax.ShapeDtypeStruct((Mp, P), jnp.float32)),
        grid=(Mp // tm,),
        in_specs=[
            pl.BlockSpec((tm, P), lambda i: (i, 0)),
            pl.BlockSpec((tm, C), lambda i: (i, 0)),
            pl.BlockSpec((tm, K), lambda i: (i, 0)),
            pl.BlockSpec((tm, K), lambda i: (i, 0)),
            pl.BlockSpec((tm, K), lambda i: (i, 0)),
            pl.BlockSpec((1, H), lambda i: (0, 0)),
            pl.BlockSpec((C, H), lambda i: (0, 0)),
            pl.BlockSpec((1, H), lambda i: (0, 0)),
            pl.BlockSpec((1, H), lambda i: (0, 0)),
            pl.BlockSpec((1, 1), lambda i: (0, 0)),
        ],
        out_specs=(pl.BlockSpec((tm, P), lambda i: (i, 0)),
                   pl.BlockSpec((tm, P), lambda i: (i, 0))),
        compiler_params=pltpu.CompilerParams(dimension_semantics=("parallel",)),
        cost_estimate=pl.CostEstimate(flops=flops, transcendentals=transcendentals,
                                      bytes_accessed=bytes_accessed),
    )(padr(x_cat), padr(ctx), padr(logits), padr(locs), padr(scales, 1.0),
      w1x, w1c, b1, w2r, b2)
    return energy[:M], logq[:M]


# --------- fused epilogue: log_normalizer + final per-batch row sums ---------

def _epilogue_kernel(energy_ref, logq_ref,
                     unnorm_ref, lognorm_ref, logd_ref, logpd_ref, *, S):
    e = energy_ref[...]                               # (tb, dim, 1+S)
    lq = logq_ref[...]                                # (tb, dim, 1+S)
    unnorm = e[:, :, 0]                               # (tb, dim)
    d = e[:, :, 1:] - lq[:, :, 1:]                    # (tb, dim, S)
    m = jnp.max(d, axis=-1)
    lse = m + jnp.log(jnp.sum(jnp.exp(d - m[:, :, None]), axis=-1))
    lognorm = lse - math.log(float(S))                # (tb, dim)
    unnorm_ref[...] = unnorm
    lognorm_ref[...] = lognorm
    logd_ref[...] = jnp.sum(unnorm - lognorm, axis=-1, keepdims=True)
    logpd_ref[...] = jnp.sum(lq[:, :, 0], axis=-1, keepdims=True)


def epilogue_pallas(energy_bdp, logq_bdp, S, tb=256):
    B, dim, P = energy_bdp.shape
    tb = min(tb, _round_up(B, 8))
    Bp = _round_up(B, tb)
    pad = Bp - B
    if pad:
        energy_bdp = jnp.pad(energy_bdp, ((0, pad), (0, 0), (0, 0)))
        logq_bdp = jnp.pad(logq_bdp, ((0, pad), (0, 0), (0, 0)))
    unnorm, lognorm, logd, logpd = pl.pallas_call(
        partial(_epilogue_kernel, S=S),
        out_shape=(jax.ShapeDtypeStruct((Bp, dim), jnp.float32),
                   jax.ShapeDtypeStruct((Bp, dim), jnp.float32),
                   jax.ShapeDtypeStruct((Bp, 1), jnp.float32),
                   jax.ShapeDtypeStruct((Bp, 1), jnp.float32)),
        grid=(Bp // tb,),
        in_specs=[pl.BlockSpec((tb, dim, P), lambda i: (i, 0, 0)),
                  pl.BlockSpec((tb, dim, P), lambda i: (i, 0, 0))],
        out_specs=(pl.BlockSpec((tb, dim), lambda i: (i, 0)),
                   pl.BlockSpec((tb, dim), lambda i: (i, 0)),
                   pl.BlockSpec((tb, 1), lambda i: (i, 0)),
                   pl.BlockSpec((tb, 1), lambda i: (i, 0))),
        compiler_params=pltpu.CompilerParams(dimension_semantics=("parallel",)),
    )(energy_bdp, logq_bdp)
    return unnorm[:B], lognorm[:B], logd[:B, 0], logpd[:B, 0]


# ------------------------------ AEM forward ----------------------------------

def aem_forward(params, inputs, key, *, n_proposal_samples, context_dim,
                n_mix, min_scale=1e-3):
    B, dim = inputs.shape
    S = n_proposal_samples
    P = 1 + S
    mult = context_dim + 3 * n_mix

    # autoregressive net (MADE stand-in): (B, dim) -> (B, dim, mult)
    ar_out = mlp_pallas(inputs, params["ar_w1"], params["ar_b1"],
                        params["ar_w2"], params["ar_b2"]).reshape(B, dim, mult)
    context_params = ar_out[..., :context_dim]                      # (B, dim, C)
    proposal_params = ar_out[..., context_dim:]                     # (B, dim, 3K)
    logits = proposal_params[..., :n_mix]
    locs = proposal_params[..., n_mix:2 * n_mix]
    scales = min_scale + jax.nn.softplus(proposal_params[..., 2 * n_mix:])

    # sample S proposal points per (b, d) from the Gaussian mixture (glue / RNG)
    k1, k2 = jax.random.split(key)
    comp = jax.random.categorical(k1, logits, axis=-1, shape=(S, B, dim))
    eps = jax.random.normal(k2, (S, B, dim), jnp.float32)
    loc_sel = jnp.take_along_axis(locs[None], comp[..., None], axis=-1)[..., 0]
    scale_sel = jnp.take_along_axis(scales[None], comp[..., None], axis=-1)[..., 0]
    proposal_samples = jnp.transpose(loc_sel + scale_sel * eps, (1, 2, 0))  # (B, dim, S)

    M = B * dim
    # (data point, samples) side by side -> single lane-dense (M, 1+S) layout
    x_cat = jnp.concatenate([inputs[..., None], proposal_samples], axis=-1)  # (B, dim, P)

    energy_all, logq_all = row_kernel_pallas(
        x_cat.reshape(M, P),
        context_params.reshape(M, context_dim),
        logits.reshape(M, n_mix),
        locs.reshape(M, n_mix),
        scales.reshape(M, n_mix),
        params["en_w1"], params["en_b1"], params["en_w2"], params["en_b2"])

    unnorm_train, log_normalizer, log_density, log_prop_density = epilogue_pallas(
        energy_all.reshape(B, dim, P), logq_all.reshape(B, dim, P), S)

    return log_density, log_prop_density, unnorm_train, log_normalizer


# ----------------------------------- main ------------------------------------

if __name__ == "__main__":
    B, dim = 4, 8
    context_dim, n_mix, S = 16, 4, 8       # training mode: n_proposal_samples_per_input
    hidden_ar, hidden_en = 32, 32
    mult = context_dim + 3 * n_mix

    key = jax.random.PRNGKey(0)
    ks = jax.random.split(key, 10)
    params = {
        "ar_w1": 0.1 * jax.random.normal(ks[0], (dim, hidden_ar), jnp.float32),
        "ar_b1": 0.01 * jax.random.normal(ks[1], (hidden_ar,), jnp.float32),
        "ar_w2": 0.1 * jax.random.normal(ks[2], (hidden_ar, dim * mult), jnp.float32),
        "ar_b2": 0.01 * jax.random.normal(ks[3], (dim * mult,), jnp.float32),
        "en_w1": 0.1 * jax.random.normal(ks[4], (1 + context_dim, hidden_en), jnp.float32),
        "en_b1": 0.01 * jax.random.normal(ks[5], (hidden_en,), jnp.float32),
        "en_w2": 0.1 * jax.random.normal(ks[6], (hidden_en, 1), jnp.float32),
        "en_b2": 0.01 * jax.random.normal(ks[7], (1,), jnp.float32),
    }
    inputs = jax.random.normal(ks[8], (B, dim), jnp.float32)

    outs = aem_forward(params, inputs, ks[9],
                       n_proposal_samples=S, context_dim=context_dim, n_mix=n_mix)
    jax.block_until_ready(outs)

    log_density, log_prop_density, unnorm_train, log_normalizer = outs
    assert log_density.shape == (B,)
    assert log_prop_density.shape == (B,)
    assert unnorm_train.shape == (B, dim)
    assert log_normalizer.shape == (B, dim)
    assert all(bool(jnp.all(jnp.isfinite(o))) for o in outs)
    print("KERNEL_OK")
</pallas_src>

<mosaic_0001>
module attributes {stable_mosaic.version = 11 : i64} {
  func.func @_mlp_kernel(%arg0: i32, %arg1: memref<8x8xf32, #tpu.memory_space<vmem>>, %arg2: memref<8x32xbf16, #tpu.memory_space<vmem>>, %arg3: memref<1x32xf32, #tpu.memory_space<vmem>>, %arg4: memref<32x224xbf16, #tpu.memory_space<vmem>>, %arg5: memref<1x224xf32, #tpu.memory_space<vmem>>, %arg6: memref<8x224xf32, #tpu.memory_space<vmem>>) attributes {dimension_semantics = [#tpu.dimension_semantics<parallel>], iteration_bounds = array<i64: 1>, scalar_prefetch = 0 : i64, scratch_operands = 0 : i64, tpu.core_type = #tpu.core_type<tc>, window_params = [{transform_indices = @transform_0, window_bounds = array<i64: 8, 8>}, {pipeline_mode = #tpu.pipeline_mode<synchronous>, transform_indices = @transform_1, window_bounds = array<i64: 8, 32>}, {pipeline_mode = #tpu.pipeline_mode<synchronous>, transform_indices = @transform_2, window_bounds = array<i64: 1, 32>}, {pipeline_mode = #tpu.pipeline_mode<synchronous>, transform_indices = @transform_3, window_bounds = array<i64: 32, 224>}, {pipeline_mode = #tpu.pipeline_mode<synchronous>, transform_indices = @transform_4, window_bounds = array<i64: 1, 224>}, {transform_indices = @transform_5, window_bounds = array<i64: 8, 224>}]} {
    %c0 = arith.constant 0 : index
    %c0_0 = arith.constant 0 : index
    %0 = vector.load %arg1[%c0, %c0_0] : memref<8x8xf32, #tpu.memory_space<vmem>>, vector<8x8xf32>
    %1 = arith.truncf %0 : vector<8x8xf32> to vector<8x8xbf16>
    %c0_1 = arith.constant 0 : index
    %c0_2 = arith.constant 0 : index
    %2 = vector.load %arg2[%c0_1, %c0_2] : memref<8x32xbf16, #tpu.memory_space<vmem>>, vector<8x32xbf16>
    %cst = arith.constant dense<0.000000e+00> : vector<8x32xf32>
    %3 = tpu.matmul %1, %2, %cst {dimension_numbers = #tpu.dot_dimension_numbers<[1], [0], [0], [1], [0, 0, 1, 1], [], []>} : vector<8x8xbf16>, vector<8x32xbf16>, vector<8x32xf32> -> vector<8x32xf32>
    %c0_3 = arith.constant 0 : index
    %c0_4 = arith.constant 0 : index
    %4 = vector.load %arg3[%c0_3, %c0_4] : memref<1x32xf32, #tpu.memory_space<vmem>>, vector<1x32xf32>
    %5 = vector.broadcast %4 : vector<1x32xf32> to vector<8x32xf32>
    %6 = arith.addf %3, %5 : vector<8x32xf32>
    %cst_5 = arith.constant 0.000000e+00 : f32
    %7 = vector.broadcast %cst_5 : f32 to vector<8x32xf32>
    %8 = arith.maximumf %6, %7 : vector<8x32xf32>
    %9 = arith.truncf %8 : vector<8x32xf32> to vector<8x32xbf16>
    %c0_6 = arith.constant 0 : index
    %c0_7 = arith.constant 0 : index
    %10 = vector.load %arg4[%c0_6, %c0_7] : memref<32x224xbf16, #tpu.memory_space<vmem>>, vector<32x224xbf16>
    %cst_8 = arith.constant dense<0.000000e+00> : vector<8x224xf32>
    %11 = tpu.matmul %9, %10, %cst_8 {dimension_numbers = #tpu.dot_dimension_numbers<[1], [0], [0], [1], [0, 0, 1, 1], [], []>} : vector<8x32xbf16>, vector<32x224xbf16>, vector<8x224xf32> -> vector<8x224xf32>
    %c0_9 = arith.constant 0 : index
    %c0_10 = arith.constant 0 : index
    %12 = vector.load %arg5[%c0_9, %c0_10] : memref<1x224xf32, #tpu.memory_space<vmem>>, vector<1x224xf32>
    %13 = vector.broadcast %12 : vector<1x224xf32> to vector<8x224xf32>
    %14 = arith.addf %11, %13 : vector<8x224xf32>
    %c0_11 = arith.constant 0 : index
    %c0_12 = arith.constant 0 : index
    %15 = vector.load %arg6[%c0_11, %c0_12] : memref<8x224xf32, #tpu.memory_space<vmem>>, vector<8x224xf32>
    tpu.vector_store %arg6[%c0_11, %c0_12], %14 {strides = array<i32>} : memref<8x224xf32, #tpu.memory_space<vmem>>, vector<8x224xf32>,
    return
  }
  func.func @transform_0(%arg0: i32) -> (i32, i32) {
    %c0_i32 = arith.constant 0 : i32
    %c0_i32_0 = arith.constant 0 : i32
    return %arg0, %c0_i32 : i32, i32
  }
  func.func @transform_1(%arg0: i32) -> (i32, i32) {
    %c0_i32 = arith.constant 0 : i32
    %c0_i32_0 = arith.constant 0 : i32
    %c0_i32_1 = arith.constant 0 : i32
    return %c0_i32, %c0_i32_0 : i32, i32
  }
  func.func @transform_2(%arg0: i32) -> (i32, i32) {
    %c0_i32 = arith.constant 0 : i32
    %c0_i32_0 = arith.constant 0 : i32
    %c0_i32_1 = arith.constant 0 : i32
    return %c0_i32, %c0_i32_0 : i32, i32
  }
  func.func @transform_3(%arg0: i32) -> (i32, i32) {
    %c0_i32 = arith.constant 0 : i32
    %c0_i32_0 = arith.constant 0 : i32
    %c0_i32_1 = arith.constant 0 : i32
    return %c0_i32, %c0_i32_0 : i32, i32
  }
  func.func @transform_4(%arg0: i32) -> (i32, i32) {
    %c0_i32 = arith.constant 0 : i32
    %c0_i32_0 = arith.constant 0 : i32
    %c0_i32_1 = arith.constant 0 : i32
    return %c0_i32, %c0_i32_0 : i32, i32
  }
  func.func @transform_5(%arg0: i32) -> (i32, i32) {
    %c0_i32 = arith.constant 0 : i32
    %c0_i32_0 = arith.constant 0 : i32
    return %arg0, %c0_i32 : i32, i32
  }
}

</mosaic_0001>

<bundles_post_ra>
// kernel: tpu_custom_call.1
= control target key start
LH: loop header
LB: loop body
LE: loop exit
PB: predicated region body
PF: predicated region fallthrough
CT: control target
= control target key end

     0   :  { %10 = vsyncpa [#allocation3], 0  ;;  %s436_s0 = inlined_call_operand.hbm [shape: f32[8,8], index: 0, kind: input, shape index: {}]   ;;  %s437_s1 = inlined_call_operand.hbm [shape: bf16[8,32], index: 1, kind: input, shape index: {}]   ;;  %s438_s2 = inlined_call_operand.vmem [shape: f32[1,32], index: 2, kind: input, shape index: {}]   ;;  %s439_s3 = inlined_call_operand.hbm [shape: bf16[32,224], index: 3, kind: input, shape index: {}]   ;;  %s440_s4 = inlined_call_operand.vmem [shape: f32[1,224], index: 4, kind: input, shape index: {}]   ;;  %s441_s5 = inlined_call_operand.hbm [shape: f32[8,224], index: 5, kind: output, shape index: {}]  }
   0x1   :  { %11 = vsyncpa [#allocation6], 0 }
   0x2   :  { %12 = vsyncpa [#allocation4], 0  ;;  %s343_s18 = smov [#allocation5]   ;;  %s344_s20 = smov [#allocation2]  }
   0x3   :  { %s29_s19 = sshll.u32 %s343_s18, 4  ;;  %s19_s21 = sshll.u32 %s344_s20, 4  ;;  %s30_s19 = int_to_ptr.vmem [resolvable:$true] %s29_s19  ;;  %s20_s21 = int_to_ptr.vmem [resolvable:$true] %s19_s21 }
   0x4   :  { %s249_s24 = scalar_lea.hbm %s437_s1, 64 }
   0x5   :  { %p250_p0 = scmp.ne.s32.totalorder %s437_s1, %s249_s24  ;;  %p253_p1 = scmp.lt.u32.totalorder %s249_s24, %s437_s1 }
   0x7   :  { %p255_p2 = pnand %p253_p1, %p250_p0 }
   0x9   :  { %258 = shalt.err (!%p255_p2)
}
   0xa   :  { %s259_s29 = scalar_lea.vmem %s30_s19, 64  ;;  %p264_p4 = scmp.lt.s32.totalorder %s30_s19, %s30_s19 }
   0xb   :  { %p260_p3 = scmp.ne.s32.totalorder %s30_s19, %s259_s29  ;;  %p265_p5 = scmp.lt.s32.totalorder %s259_s29, %s259_s29 }
   0xd   :  { %p266_p6 = por %p265_p5, %p264_p4 }
   0xf   :  { %p267_p7 = pnand %p266_p6, %p260_p3 }
  0x11   :  { %270 = shalt.err (!%p267_p7)
}
  0x12   :  { %32 = dma.hbm_to_vmem [thread:$0]  %s437_s1, 64, %s30_s19, [#allocation6]  }
  0x13   :  { %s271_s9 = scalar_lea.hbm %s436_s0, 128 }
  0x14   :  { %p272_p8 = scmp.ne.s32.totalorder %s436_s0, %s271_s9  ;;  %p275_p9 = scmp.lt.u32.totalorder %s271_s9, %s436_s0 }
  0x16   :  { %p277_p10 = pnand %p275_p9, %p272_p8 }
  0x18   :  { %280 = shalt.err (!%p277_p10)
}
  0x19   :  { %s281_s14 = scalar_lea.vmem %s20_s21, 128  ;;  %p286_p12 = scmp.lt.s32.totalorder %s20_s21, %s20_s21 }
  0x1a   :  { %p282_p11 = scmp.ne.s32.totalorder %s20_s21, %s281_s14  ;;  %p287_p13 = scmp.lt.s32.totalorder %s281_s14, %s281_s14 }
  0x1c   :  { %p288_p0 = por %p287_p13, %p286_p12 }
  0x1e   :  { %p289_p1 = pnand %p288_p0, %p282_p11 }
  0x20   :  { %292 = shalt.err (!%p289_p1)
}
  0x21   :  { %22 = dma.hbm_to_vmem [thread:$0]  %s436_s0, 128, %s20_s21, [#allocation3]  }
  0x22   :  { %s345_s16 = smov [#allocation7]   ;;  %s293_s20 = scalar_lea.hbm %s439_s3, 512 }
  0x23   :  { %s40_s17 = sshll.u32 %s345_s16, 4  ;;  %p294_p2 = scmp.ne.s32.totalorder %s439_s3, %s293_s20  ;;  %s41_s17 = int_to_ptr.vmem [resolvable:$true] %s40_s17 }
  0x24   :  { %p297_p3 = scmp.lt.u32.totalorder %s293_s20, %s439_s3 }
  0x26   :  { %p299_p4 = pnand %p297_p3, %p294_p2 }
  0x28   :  { %302 = shalt.err (!%p299_p4)
}
  0x29   :  { %s303_s26 = scalar_lea.vmem %s41_s17, 512  ;;  %p308_p6 = scmp.lt.s32.totalorder %s41_s17, %s41_s17 }
  0x2a   :  { %p304_p5 = scmp.ne.s32.totalorder %s41_s17, %s303_s26  ;;  %p309_p7 = scmp.lt.s32.totalorder %s303_s26, %s303_s26 }
  0x2c   :  { %p310_p8 = por %p309_p7, %p308_p6 }
  0x2e   :  { %p311_p9 = pnand %p310_p8, %p304_p5 }
  0x30   :  { %314 = shalt.err (!%p311_p9)
}
  0x31   :  { %s346_s0 = smov 128   ;;  %s347_s21 = smov 8  }
  0x32   :  { %46 = dma.hbm_to_vmem [thread:$0]  %s439_s3, 512, %s41_s17, [#allocation6], %s346_s0, %s346_s0, %s347_s21  }
  0x33   :  { %337 = dma.done.wait [#allocation3], 128  }
  0x34   :  { %338 = vsyncadd [#allocation3], 4294967168 }
  0x35   :  { %339 = dma.done.wait [#allocation6], 576  }
  0x36   :  { %340 = vsyncadd [#allocation6], 4294966720  ;;  %v348_v0 = vmov 0.0   ;;  %vm349_vm0 = vmmov 0   ;;  %vm73_vm1 = vcmask 1043456   ;;  %v59_v2 = vld [vmem:[#allocation2] sm:$0xff]  ;;  %v125_v18 = vlaneseq }
  0x37   :  { %228 = vmatprep.subr.bf16.mxu0 %v348_v0  ;;  %230 = vmatprep.mubr.msk.bf16.mxu0 %vm349_vm0, %v348_v0  ;;  %v61_v1 = vld [vmem:[#allocation5] sm:$0xf]  ;;  %v60_v4 = vpack.c.bf16 %v59_v2, %v59_v2  ;;  %v243_v5 = vld [vmem:[#allocation7 + $0x4] ss:$8 sps:$4 sm:$0xff]   ;;  %vm69_vm2 = vcmask 64512   ;;  %v350_v9 = vmov 0  }
  0x38   :  { %v75_v3 = vsel %vm73_vm1, %v61_v1, 0  ;;  %159 = vmatprep.subr.bf16.mxu1 %v243_v5  ;;  %v245_v6 = vld [vmem:[#allocation7] ss:$8 sps:$4 sm:$0xff]   ;;  %v246_v7 = vld [vmem:[#allocation7 + $0x14] ss:$8 sps:$4 sm:$0xff]   ;;  %191 = vmatprep.mubr.bf16.mxu1 %v350_v9  ;;  %vm155_vm3 = vcmask 261120  }
  0x39   :  { %229 = vmatpush3.bf16.msra.mxu0 %v75_v3  ;;  %160 = vmatpush1.bf16.msra.mxu1 %v245_v6  ;;  %v248_v8 = vld [vmem:[#allocation7 + $0x10] ss:$8 sps:$4 sm:$0xff]   ;;  %v219_v10 = vld [vmem:[%s438_s2] ss:$0 sm:$0xff]  ;;  %v126_v19 = vshrl.u32 %v125_v18, 7  ;;  %s351_s2 = smov [#allocation8]  }
  0x3a   :  { %161 = vmatprep.subr.bf16.mxu1 %v246_v7  ;;  %v123_v21 = vld [vmem:[%s440_s4] sm:$0x3]  ;;  %s209_s7 = sshll.u32 %s351_s2, 4  ;;  %vm201_vm4 = vcmask 785408   ;;  %s210_s7 = int_to_ptr.vmem [resolvable:$true] %s209_s7 }
  0x3b   :  { %v127_v20 = vsub.s32 0, %v126_v19  ;;  %v131_v22 = vsub.s32 1, %v126_v19  ;;  %s315_s8 = scalar_lea.vmem %s210_s7, 256  ;;  %p320_p11 = scmp.lt.s32.totalorder %s210_s7, %s210_s7 }
  0x3c   :  { %231 = vmatmul.mubr.msk.bf16.vlgmr.msra.gmra.mrb[0].mxu0 %vm69_vm2, %v60_v4  ;;  %p316_p10 = scmp.ne.s32.totalorder %s210_s7, %s315_s8  ;;  %p321_p12 = scmp.lt.s32.totalorder %s315_s8, %s315_s8 }
  0x3d   :  { %162 = vmatpush1.bf16.msra.mxu1 %v248_v8  ;;  %v128_v23 = vrot.slane %v123_v21, %v127_v20  ;;  %v132_v24 = vrot.slane %v123_v21, %v131_v22 }
  0x3e   :  { %p322_p13 = por %p321_p12, %p320_p11 }
  0x40   :  { %p323_p0 = pnand %p322_p13, %p316_p10 }
 0x10f   :  { %v111_v11 = vpop.f32.mrb[0].mxu0 }
 0x110   :  { %v112_v12 = vadd.f32 %v219_v10, %v111_v11  ;;  %v232_v13 = vpop.f32.mrb[1].mxu0 }
 0x111   :  { %v114_v14 = vpop.f32.mrb[2].mxu0 }
 0x112   :  { %v117_v15 = vmax.f32 %v112_v12, 0.0  ;;  %v233_v16 = vpop.f32.mrb[3].mxu0 }
 0x114   :  { %v118_v17 = vpack.c.bf16 %v117_v15, %v117_v15 }
 0x116   :  { %225 = vmatmul.mubr.msk.bf16.vlgmr.msra.gmra.mrb[0].mxu1 %vm155_vm3, %v118_v17 }
 0x1e9   :  { %v193_v25 = vpop.f32.mrb[0].mxu1 }
 0x1ea   :  { %v194_v26 = vadd.f32 %v193_v25, %v128_v23  ;;  %v195_v27 = vpop.f32.mrb[1].mxu1 }
 0x1eb   :  { %v196_v28 = vadd.f32 %v195_v27, %v132_v24  ;;  %v197_v29 = vpop.f32.mrb[2].mxu1 }
 0x1ec   :  { %200 = vst [vmem:[#allocation8] sm:$0xff] %v194_v26  ;;  %v198_v30 = vpop.f32.mrb[3].mxu1 }
 0x1ed   :  { %202 = vst.msk [vmem:[#allocation8 + $0x8] sm:$0xff] %vm201_vm4, %v196_v28 }
 0x1ee   :  { %326 = shalt.err (!%p323_p0)
}
 0x1ef   :  { %s327_s10 = scalar_lea.hbm %s441_s5, 256 }
 0x1f0   :  { %p328_p1 = scmp.ne.s32.totalorder %s441_s5, %s327_s10  ;;  %p331_p2 = scmp.lt.u32.totalorder %s327_s10, %s441_s5 }
 0x1f2   :  { %p333_p3 = pnand %p331_p2, %p328_p1 }
 0x1f4   :  { %336 = shalt.err (!%p333_p3)
}
 0x1f5   :  { %212 = dma.vmem_to_hbm [thread:$0]  %s210_s7, 256, %s441_s5, [#allocation4]  }
 0x1f6   :  { %341 = dma.done.wait [#allocation4], 256  }
 0x1f7   :  { %342 = vsyncadd [#allocation4], 4294967040 }
 0x1f8   :  { %216 = vsyncpa [#allocation3], 1 }
 0x1f9   :  { %217 = vsyncpa [#allocation6], 1 }
 0x1fa   :  { %218 = vsyncpa [#allocation4], 1 }

</bundles_post_ra>
